<compile_context>
chip_gen: v6e
topology: v6e:2x2x1
jax: 0.10.0
libtpu: 0.0.40
codegen_flags: <defaults>
</compile_context>

<pallas_src>
import jax
import jax.numpy as jnp
from jax.experimental import pallas as pl
from jax.experimental.pallas import tpu as pltpu

IN_DIM = 512
H1_DIM = 256
H2_DIM = 128
OUT_DIM = 1


def _round_up(n, m):
    return ((n + m - 1) // m) * m


def _cdiv(a, b):
    return -(-a // b)


def _mlp_kernel(x_ref, w1_ref, b1_ref, w2_ref, b2_ref, w3_ref, b3_ref, o_ref):
    # In-kernel f32 -> bf16 cast of the x tile (VPU work, hidden under the x DMA).
    x = x_ref[...].astype(jnp.bfloat16)
    # layer1: Linear(512 -> 256) + ReLU. bf16 operands, f32 accumulation on MXU.
    h1 = jnp.dot(x, w1_ref[...], preferred_element_type=jnp.float32)
    h1 = jnp.maximum(h1 + b1_ref[...], 0.0)
    # layer2: Linear(256 -> 128) + ReLU.
    h2 = jnp.dot(h1.astype(jnp.bfloat16), w2_ref[...],
                 preferred_element_type=jnp.float32)
    h2 = jnp.maximum(h2 + b2_ref[...], 0.0)
    # layer3: Linear(128 -> 1). An N=1 matmul wastes a full MXU pass, so do it
    # as a VPU multiply + cross-lane reduce (XLU). w3_ref is a [1, 128] f32 row.
    # Bias-add / ReLU / reduce stay in f32 (v5e VPU has no bf16 path).
    out = jnp.sum(h2 * w3_ref[...], axis=-1, keepdims=True) + b3_ref[...]
    o_ref[...] = out.astype(o_ref.dtype)


def prepare_params(params):
    """One-time conversion of fp32 [in,out] params into kernel-ready layout/dtypes."""
    return {
        "w1": params["w1"].astype(jnp.bfloat16),
        "b1": params["b1"].astype(jnp.float32).reshape(1, H1_DIM),
        "w2": params["w2"].astype(jnp.bfloat16),
        "b2": params["b2"].astype(jnp.float32).reshape(1, H2_DIM),
        # Final-layer weight as a [1, 128] f32 row for the VPU/XLU path.
        "w3_row": params["w3"].astype(jnp.float32).reshape(OUT_DIM, H2_DIM),
        "b3": params["b3"].astype(jnp.float32).reshape(1, OUT_DIM),
    }


def _choose_tile(batch, batch_tile):
    if batch > batch_tile:
        return batch_tile
    # Whole batch fits in one tile.  For moderate batches still emit >= 2 grid
    # steps so both v7x TensorCores get work (dimension_semantics="parallel").
    if batch >= 512:
        return _round_up(_cdiv(batch, 2), 8)
    return _round_up(max(batch, 1), 8)


def two_hidden_net_forward(x, prepared, *, batch_tile=2048):
    """x: [B, 512] float32. prepared: output of prepare_params()."""
    B = x.shape[0]
    tile = _choose_tile(B, batch_tile)
    grid = (_cdiv(B, tile),)  # ragged last block handled by Pallas masking

    full = lambda shape: pl.BlockSpec(shape, lambda i: (0, 0))

    flops = 2 * B * (IN_DIM * H1_DIM + H1_DIM * H2_DIM + H2_DIM * OUT_DIM)
    bytes_accessed = (
        B * IN_DIM * 4                               # x (f32, read once in-kernel)
        + IN_DIM * H1_DIM * 2 + H1_DIM * H2_DIM * 2  # w1, w2 (bf16)
        + (H1_DIM + H2_DIM + H2_DIM + OUT_DIM) * 4   # b1, b2, w3_row, b3 (f32)
        + B * OUT_DIM * 4                            # output (f32)
    )

    # Explicit scoped-VMEM budget with headroom: 2x-buffered x/out tiles,
    # resident weights, plus f32/bf16 intermediates (h1, h2, casts).
    x_tile_bytes = tile * IN_DIM * 4
    out_tile_bytes = tile * OUT_DIM * 4
    weight_bytes = (IN_DIM * H1_DIM + H1_DIM * H2_DIM) * 2 \
        + (H1_DIM + H2_DIM + H2_DIM + OUT_DIM) * 4
    interm_bytes = tile * (IN_DIM * 2 + H1_DIM * 4 + H1_DIM * 2 + H2_DIM * 4 + H2_DIM * 4)
    vmem_est = 2 * (x_tile_bytes + out_tile_bytes) + 2 * weight_bytes + interm_bytes
    vmem_limit = min(max(2 * vmem_est, 32 * 1024 * 1024), 48 * 1024 * 1024)

    out = pl.pallas_call(
        _mlp_kernel,
        out_shape=jax.ShapeDtypeStruct((B, OUT_DIM), jnp.float32),
        grid_spec=pltpu.PrefetchScalarGridSpec(
            num_scalar_prefetch=0,
            grid=grid,
            in_specs=[
                pl.BlockSpec((tile, IN_DIM), lambda i: (i, 0)),  # x tile (f32)
                full((IN_DIM, H1_DIM)),    # w1 (resident, bf16)
                full((1, H1_DIM)),         # b1
                full((H1_DIM, H2_DIM)),    # w2 (resident, bf16)
                full((1, H2_DIM)),         # b2
                full((OUT_DIM, H2_DIM)),   # w3 as a [1,128] f32 row
                full((1, OUT_DIM)),        # b3
            ],
            out_specs=pl.BlockSpec((tile, OUT_DIM), lambda i: (i, 0)),
        ),
        compiler_params=pltpu.CompilerParams(
            dimension_semantics=("parallel",),
            vmem_limit_bytes=int(vmem_limit),
        ),
        cost_estimate=pl.CostEstimate(
            flops=flops, transcendentals=0, bytes_accessed=bytes_accessed),
    )(x, prepared["w1"], prepared["b1"], prepared["w2"], prepared["b2"],
      prepared["w3_row"], prepared["b3"])

    return out


def _xavier_uniform(key, fan_in, fan_out):
    # matches torch.nn.init.xavier_uniform_ (gain=1) for a Linear weight,
    # stored transposed: shape [fan_in, fan_out]
    limit = jnp.sqrt(6.0 / (fan_in + fan_out))
    return jax.random.uniform(key, (fan_in, fan_out), jnp.float32, -limit, limit)


def _linear_bias(key, fan_in, fan_out):
    # matches PyTorch nn.Linear default bias init: U(-1/sqrt(fan_in), 1/sqrt(fan_in))
    bound = 1.0 / jnp.sqrt(float(fan_in))
    return jax.random.uniform(key, (1, fan_out), jnp.float32, -bound, bound)


def init_params(key):
    k = jax.random.split(key, 6)
    return {
        "w1": _xavier_uniform(k[0], IN_DIM, H1_DIM),
        "b1": _linear_bias(k[1], IN_DIM, H1_DIM),
        "w2": _xavier_uniform(k[2], H1_DIM, H2_DIM),
        "b2": _linear_bias(k[3], H1_DIM, H2_DIM),
        "w3": _xavier_uniform(k[4], H2_DIM, OUT_DIM),
        "b3": _linear_bias(k[5], H2_DIM, OUT_DIM),
    }


def _reference_forward_matched(x, p):
    """Reference matching the kernel's bf16-operand / f32-accumulate numerics."""
    h1 = jnp.dot(x.astype(jnp.bfloat16), p["w1"].astype(jnp.bfloat16),
                 preferred_element_type=jnp.float32)
    h1 = jnp.maximum(h1 + p["b1"], 0.0)
    h2 = jnp.dot(h1.astype(jnp.bfloat16), p["w2"].astype(jnp.bfloat16),
                 preferred_element_type=jnp.float32)
    h2 = jnp.maximum(h2 + p["b2"], 0.0)
    return jnp.sum(h2 * p["w3"].reshape(1, H2_DIM), axis=-1, keepdims=True) + p["b3"]


def _reference_forward_f32(x, p):
    """True fp32 forward matching the PyTorch module exactly."""
    h1 = jnp.maximum(jnp.dot(x, p["w1"]) + p["b1"], 0.0)
    h2 = jnp.maximum(jnp.dot(h1, p["w2"]) + p["b2"], 0.0)
    return jnp.dot(h2, p["w3"]) + p["b3"]


def _check(out, x, params, tag):
    ref_bf16 = _reference_forward_matched(x, params)
    ref_f32 = _reference_forward_f32(x, params)
    assert jnp.allclose(out, ref_bf16, atol=1e-3, rtol=1e-3), \
        f"mismatch vs bf16-matched reference ({tag})"
    assert jnp.allclose(out, ref_f32, atol=5e-2, rtol=5e-2), \
        f"mismatch vs fp32 reference ({tag})"


if __name__ == "__main__":
    key = jax.random.PRNGKey(0)
    pkey, k1, k2, k3 = jax.random.split(key, 4)
    params = init_params(pkey)
    prepared = prepare_params(params)   # one-time kernel-ready cast/reshape

    fwd = jax.jit(two_hidden_net_forward, static_argnames=("batch_tile",))

    # Small batch: single grid step.
    B = 8
    x = jax.random.normal(k1, (B, IN_DIM), jnp.float32)
    out = jax.block_until_ready(fwd(x, prepared))
    assert out.shape == (B, OUT_DIM)
    _check(out, x, params, "B=8")

    # Non-multiple-of-8 batch: exercises Pallas edge-block masking (no jnp.pad).
    B2 = 12
    x2 = jax.random.normal(k2, (B2, IN_DIM), jnp.float32)
    out2 = jax.block_until_ready(fwd(x2, prepared))
    assert out2.shape == (B2, OUT_DIM)
    _check(out2, x2, params, "B=12")

    # Multi-step grid with a ragged last block (small batch_tile override).
    B3 = 40
    x3 = jax.random.normal(k3, (B3, IN_DIM), jnp.float32)
    out3 = jax.block_until_ready(fwd(x3, prepared, batch_tile=16))
    assert out3.shape == (B3, OUT_DIM)
    _check(out3, x3, params, "B=40,tile=16")

    print("KERNEL_OK")
</pallas_src>

<mosaic_0001>
module attributes {stable_mosaic.version = 11 : i64} {
  func.func @_mlp_kernel(%arg0: i32, %arg1: memref<8x512xf32, #tpu.memory_space<vmem>>, %arg2: memref<512x256xbf16, #tpu.memory_space<vmem>>, %arg3: memref<1x256xf32, #tpu.memory_space<vmem>>, %arg4: memref<256x128xbf16, #tpu.memory_space<vmem>>, %arg5: memref<1x128xf32, #tpu.memory_space<vmem>>, %arg6: memref<1x128xf32, #tpu.memory_space<vmem>>, %arg7: memref<1x1xf32, #tpu.memory_space<vmem>>, %arg8: memref<8x1xf32, #tpu.memory_space<vmem>>) attributes {dimension_semantics = [#tpu.dimension_semantics<parallel>], iteration_bounds = array<i64: 1>, scalar_prefetch = 0 : i64, scratch_operands = 0 : i64, tpu.core_type = #tpu.core_type<tc>, window_params = [{transform_indices = @transform_0, window_bounds = array<i64: 8, 512>}, {pipeline_mode = #tpu.pipeline_mode<synchronous>, transform_indices = @transform_1, window_bounds = array<i64: 512, 256>}, {pipeline_mode = #tpu.pipeline_mode<synchronous>, transform_indices = @transform_2, window_bounds = array<i64: 1, 256>}, {pipeline_mode = #tpu.pipeline_mode<synchronous>, transform_indices = @transform_3, window_bounds = array<i64: 256, 128>}, {pipeline_mode = #tpu.pipeline_mode<synchronous>, transform_indices = @transform_4, window_bounds = array<i64: 1, 128>}, {pipeline_mode = #tpu.pipeline_mode<synchronous>, transform_indices = @transform_5, window_bounds = array<i64: 1, 128>}, {pipeline_mode = #tpu.pipeline_mode<synchronous>, transform_indices = @transform_6, window_bounds = array<i64: 1, 1>}, {transform_indices = @transform_7, window_bounds = array<i64: 8, 1>}]} {
    %c0 = arith.constant 0 : index
    %c0_0 = arith.constant 0 : index
    %0 = vector.load %arg1[%c0, %c0_0] : memref<8x512xf32, #tpu.memory_space<vmem>>, vector<8x512xf32>
    %1 = arith.truncf %0 : vector<8x512xf32> to vector<8x512xbf16>
    %c0_1 = arith.constant 0 : index
    %c0_2 = arith.constant 0 : index
    %2 = vector.load %arg2[%c0_1, %c0_2] : memref<512x256xbf16, #tpu.memory_space<vmem>>, vector<512x256xbf16>
    %cst = arith.constant dense<0.000000e+00> : vector<8x256xf32>
    %3 = tpu.matmul %1, %2, %cst {dimension_numbers = #tpu.dot_dimension_numbers<[1], [0], [0], [1], [0, 0, 1, 1], [], []>} : vector<8x512xbf16>, vector<512x256xbf16>, vector<8x256xf32> -> vector<8x256xf32>
    %c0_3 = arith.constant 0 : index
    %c0_4 = arith.constant 0 : index
    %4 = vector.load %arg3[%c0_3, %c0_4] : memref<1x256xf32, #tpu.memory_space<vmem>>, vector<1x256xf32>
    %5 = vector.broadcast %4 : vector<1x256xf32> to vector<8x256xf32>
    %6 = arith.addf %3, %5 : vector<8x256xf32>
    %cst_5 = arith.constant 0.000000e+00 : f32
    %7 = vector.broadcast %cst_5 : f32 to vector<8x256xf32>
    %8 = arith.maximumf %6, %7 : vector<8x256xf32>
    %9 = arith.truncf %8 : vector<8x256xf32> to vector<8x256xbf16>
    %c0_6 = arith.constant 0 : index
    %c0_7 = arith.constant 0 : index
    %10 = vector.load %arg4[%c0_6, %c0_7] : memref<256x128xbf16, #tpu.memory_space<vmem>>, vector<256x128xbf16>
    %cst_8 = arith.constant dense<0.000000e+00> : vector<8x128xf32>
    %11 = tpu.matmul %9, %10, %cst_8 {dimension_numbers = #tpu.dot_dimension_numbers<[1], [0], [0], [1], [0, 0, 1, 1], [], []>} : vector<8x256xbf16>, vector<256x128xbf16>, vector<8x128xf32> -> vector<8x128xf32>
    %c0_9 = arith.constant 0 : index
    %c0_10 = arith.constant 0 : index
    %12 = vector.load %arg5[%c0_9, %c0_10] : memref<1x128xf32, #tpu.memory_space<vmem>>, vector<1x128xf32>
    %13 = vector.broadcast %12 : vector<1x128xf32> to vector<8x128xf32>
    %14 = arith.addf %11, %13 : vector<8x128xf32>
    %cst_11 = arith.constant 0.000000e+00 : f32
    %15 = vector.broadcast %cst_11 : f32 to vector<8x128xf32>
    %16 = arith.maximumf %14, %15 : vector<8x128xf32>
    %c0_12 = arith.constant 0 : index
    %c0_13 = arith.constant 0 : index
    %17 = vector.load %arg6[%c0_12, %c0_13] : memref<1x128xf32, #tpu.memory_space<vmem>>, vector<1x128xf32>
    %18 = vector.broadcast %17 : vector<1x128xf32> to vector<8x128xf32>
    %19 = arith.mulf %16, %18 : vector<8x128xf32>
    %cst_14 = arith.constant dense<0.000000e+00> : vector<8xf32>
    %20 = vector.multi_reduction <add>, %19, %cst_14 [1] : vector<8x128xf32> to vector<8xf32>
    %21 = vector.shape_cast %20 : vector<8xf32> to vector<8x1xf32>
    %c0_15 = arith.constant 0 : index
    %c0_16 = arith.constant 0 : index
    %22 = vector.load %arg7[%c0_15, %c0_16] : memref<1x1xf32, #tpu.memory_space<vmem>>, vector<1x1xf32>
    %23 = vector.broadcast %22 : vector<1x1xf32> to vector<8x1xf32>
    %24 = arith.addf %21, %23 : vector<8x1xf32>
    %c0_17 = arith.constant 0 : index
    %c0_18 = arith.constant 0 : index
    %25 = vector.load %arg8[%c0_17, %c0_18] : memref<8x1xf32, #tpu.memory_space<vmem>>, vector<8x1xf32>
    tpu.vector_store %arg8[%c0_17, %c0_18], %24 {strides = array<i32>} : memref<8x1xf32, #tpu.memory_space<vmem>>, vector<8x1xf32>,
    return
  }
  func.func @transform_0(%arg0: i32) -> (i32, i32) {
    %c0_i32 = arith.constant 0 : i32
    %c0_i32_0 = arith.constant 0 : i32
    return %arg0, %c0_i32 : i32, i32
  }
  func.func @transform_1(%arg0: i32) -> (i32, i32) {
    %c0_i32 = arith.constant 0 : i32
    %c0_i32_0 = arith.constant 0 : i32
    %c0_i32_1 = arith.constant 0 : i32
    return %c0_i32, %c0_i32_0 : i32, i32
  }
  func.func @transform_2(%arg0: i32) -> (i32, i32) {
    %c0_i32 = arith.constant 0 : i32
    %c0_i32_0 = arith.constant 0 : i32
    %c0_i32_1 = arith.constant 0 : i32
    return %c0_i32, %c0_i32_0 : i32, i32
  }
  func.func @transform_3(%arg0: i32) -> (i32, i32) {
    %c0_i32 = arith.constant 0 : i32
    %c0_i32_0 = arith.constant 0 : i32
    %c0_i32_1 = arith.constant 0 : i32
    return %c0_i32, %c0_i32_0 : i32, i32
  }
  func.func @transform_4(%arg0: i32) -> (i32, i32) {
    %c0_i32 = arith.constant 0 : i32
    %c0_i32_0 = arith.constant 0 : i32
    %c0_i32_1 = arith.constant 0 : i32
    return %c0_i32, %c0_i32_0 : i32, i32
  }
  func.func @transform_5(%arg0: i32) -> (i32, i32) {
    %c0_i32 = arith.constant 0 : i32
    %c0_i32_0 = arith.constant 0 : i32
    %c0_i32_1 = arith.constant 0 : i32
    return %c0_i32, %c0_i32_0 : i32, i32
  }
  func.func @transform_6(%arg0: i32) -> (i32, i32) {
    %c0_i32 = arith.constant 0 : i32
    %c0_i32_0 = arith.constant 0 : i32
    %c0_i32_1 = arith.constant 0 : i32
    return %c0_i32, %c0_i32_0 : i32, i32
  }
  func.func @transform_7(%arg0: i32) -> (i32, i32) {
    %c0_i32 = arith.constant 0 : i32
    %c0_i32_0 = arith.constant 0 : i32
    return %arg0, %c0_i32 : i32, i32
  }
}

</mosaic_0001>

<bundles_post_ra>
// kernel: two_hidden_net_forward.1
= control target key start
LH: loop header
LB: loop body
LE: loop exit
PB: predicated region body
PF: predicated region fallthrough
CT: control target
= control target key end

     0   :  { %s1119_s0 = inlined_call_operand.hbm [shape: f32[8,512], index: 0, kind: input, shape index: {}]   ;;  %s1120_s1 = inlined_call_operand.hbm [shape: bf16[512,256], index: 1, kind: input, shape index: {}]   ;;  %s1121_s2 = inlined_call_operand.vmem [shape: f32[1,256], index: 2, kind: input, shape index: {}]   ;;  %s1122_s3 = inlined_call_operand.hbm [shape: bf16[256,128], index: 3, kind: input, shape index: {}]   ;;  %s1123_s4 = inlined_call_operand.vmem [shape: f32[1,128], index: 4, kind: input, shape index: {}]   ;;  %s1124_s5 = inlined_call_operand.vmem [shape: f32[1,128], index: 5, kind: input, shape index: {}]   ;;  %s1125_s6 = inlined_call_operand.<no memory space> [shape: f32[1,1], index: 6, kind: input, shape index: {}]   ;;  %s1126_s7 = inlined_call_operand.vmem [shape: f32[8,1], index: 7, kind: output, shape index: {}]  }
   0x1   :  { %v12_v0 = vstv %s1125_s6 }
   0x2   :  { %13 = vst [vmem:[#allocation2] sm:$0x1] %v12_v0 }
   0x3   :  { %14 = vsyncpa [#allocation4], 0 }
   0x4   :  { %15 = vsyncpa [#allocation6], 0  ;;  %s1048_s26 = smov [#allocation5]  }
   0x5   :  { %s31_s27 = sshll.u32 %s1048_s26, 4  ;;  %s32_s27 = int_to_ptr.vmem [resolvable:$true] %s31_s27 }
   0x6   :  { %s992_s28 = scalar_lea.vmem %s32_s27, 8192  ;;  %p997_p1 = scmp.lt.s32.totalorder %s32_s27, %s32_s27 }
   0x7   :  { %p993_p0 = scmp.ne.s32.totalorder %s32_s27, %s992_s28  ;;  %p998_p2 = scmp.lt.s32.totalorder %s992_s28, %s992_s28 }
   0x9   :  { %p999_p3 = por %p998_p2, %p997_p1 }
   0xb   :  { %p1000_p4 = pnand %p999_p3, %p993_p0 }
   0xd   :  { %1003 = shalt.err (!%p1000_p4)
}
   0xe   :  { %s1049_s29 = smov 128   ;;  %s1050_s30 = smov 8  }
   0xf   :  { %37 = dma.hbm_to_vmem [thread:$0]  %s1120_s1, 8192, %s32_s27, [#allocation6], %s1049_s29, %s1049_s29, %s1050_s30  }
  0x10   :  { %s1051_s6 = smov [#allocation3]   ;;  %s1052_s11 = smov [#allocation7]  }
  0x11   :  { %s22_s10 = sshll.u32 %s1051_s6, 4  ;;  %s45_s12 = sshll.u32 %s1052_s11, 4  ;;  %s23_s10 = int_to_ptr.vmem [resolvable:$true] %s22_s10  ;;  %s46_s12 = int_to_ptr.vmem [resolvable:$true] %s45_s12 }
  0x12   :  { %s1012_s13 = scalar_lea.vmem %s23_s10, 512  ;;  %p1017_p6 = scmp.lt.s32.totalorder %s23_s10, %s23_s10 }
  0x13   :  { %p1013_p5 = scmp.ne.s32.totalorder %s23_s10, %s1012_s13  ;;  %p1018_p7 = scmp.lt.s32.totalorder %s1012_s13, %s1012_s13 }
  0x15   :  { %p1019_p8 = por %p1018_p7, %p1017_p6 }
  0x17   :  { %p1020_p9 = pnand %p1019_p8, %p1013_p5 }
  0x19   :  { %1023 = shalt.err (!%p1020_p9)
}
  0x1a   :  { %25 = dma.hbm_to_vmem [thread:$0]  %s1119_s0, 512, %s23_s10, [#allocation4]  }
  0x1b   :  { %s1032_s16 = scalar_lea.vmem %s46_s12, 2048  ;;  %p1037_p11 = scmp.lt.s32.totalorder %s46_s12, %s46_s12 }
  0x1c   :  { %p1033_p10 = scmp.ne.s32.totalorder %s46_s12, %s1032_s16  ;;  %p1038_p12 = scmp.lt.s32.totalorder %s1032_s16, %s1032_s16 }
  0x1e   :  { %p1039_p13 = por %p1038_p12, %p1037_p11 }
  0x20   :  { %p1040_p0 = pnand %p1039_p13, %p1033_p10 }
  0x22   :  { %1043 = shalt.err (!%p1040_p0)
}
  0x23   :  { %s1053_s1 = smov 64   ;;  %s1054_s17 = smov 4  }
  0x24   :  { %51 = dma.hbm_to_vmem [thread:$0]  %s1122_s3, 2048, %s46_s12, [#allocation6], %s1053_s1, %s1053_s1, %s1054_s17  }
  0x25   :  { %1044 = dma.done.wait [#allocation4], 512  }
  0x26   :  { %1045 = vsyncadd [#allocation4], 4294966784 }
  0x27   :  { %1046 = dma.done.wait [#allocation6], 10240  }
  0x28   :  { %1047 = vsyncadd [#allocation6], 4294957056  ;;  %v872_v1 = vld [vmem:[#allocation5 + $0x74] ss:$8 sps:$4 sm:$0xff]   ;;  %v876_v3 = vld [vmem:[#allocation5 + $0x70] ss:$8 sps:$4 sm:$0xff]  }
  0x29   :  { %v874_v2 = vld [vmem:[#allocation5 + $0x174] ss:$8 sps:$4 sm:$0xff]   ;;  %472 = vmatprep.subr.bf16.mxu0 %v872_v1  ;;  %v877_v4 = vld [vmem:[#allocation5 + $0x170] ss:$8 sps:$4 sm:$0xff]   ;;  %v878_v5 = vld [vmem:[#allocation5 + $0x64] ss:$8 sps:$4 sm:$0xff]  }
  0x2a   :  { %513 = vmatprep.subr.bf16.mxu1 %v874_v2  ;;  %473 = vmatpush1.bf16.msra.mxu0 %v876_v3  ;;  %v880_v6 = vld [vmem:[#allocation5 + $0x164] ss:$8 sps:$4 sm:$0xff]   ;;  %v882_v7 = vld [vmem:[#allocation5 + $0x60] ss:$8 sps:$4 sm:$0xff]   ;;  %v884_v9 = vld [vmem:[#allocation5 + $0x54] ss:$8 sps:$4 sm:$0xff]  }
  0x2b   :  { %514 = vmatpush1.bf16.msra.mxu1 %v877_v4  ;;  %474 = vmatprep.subr.bf16.mxu0 %v878_v5  ;;  %v883_v8 = vld [vmem:[#allocation5 + $0x160] ss:$8 sps:$4 sm:$0xff]   ;;  %v886_v10 = vld [vmem:[#allocation5 + $0x154] ss:$8 sps:$4 sm:$0xff]   ;;  %v888_v11 = vld [vmem:[#allocation5 + $0x50] ss:$8 sps:$4 sm:$0xff]  }
  0x2c   :  { %515 = vmatprep.subr.bf16.mxu1 %v880_v6  ;;  %v889_v12 = vld [vmem:[#allocation5 + $0x150] ss:$8 sps:$4 sm:$0xff]   ;;  %v890_v13 = vld [vmem:[#allocation5 + $0x44] ss:$8 sps:$4 sm:$0xff]   ;;  %v894_v15 = vld [vmem:[#allocation5 + $0x40] ss:$8 sps:$4 sm:$0xff]  }
  0x2d   :  { %v892_v14 = vld [vmem:[#allocation5 + $0x144] ss:$8 sps:$4 sm:$0xff]   ;;  %v895_v16 = vld [vmem:[#allocation5 + $0x140] ss:$8 sps:$4 sm:$0xff]   ;;  %v896_v17 = vld [vmem:[#allocation5 + $0x34] ss:$8 sps:$4 sm:$0xff]  }
  0x2e   :  { %475 = vmatpush1.bf16.msra.mxu0 %v882_v7  ;;  %v898_v18 = vld [vmem:[#allocation5 + $0x134] ss:$8 sps:$4 sm:$0xff]   ;;  %v900_v19 = vld [vmem:[#allocation5 + $0x30] ss:$8 sps:$4 sm:$0xff]   ;;  %v902_v21 = vld [vmem:[#allocation5 + $0x24] ss:$8 sps:$4 sm:$0xff]  }
  0x2f   :  { %516 = vmatpush1.bf16.msra.mxu1 %v883_v8  ;;  %476 = vmatprep.subr.bf16.mxu0 %v884_v9  ;;  %v901_v20 = vld [vmem:[#allocation5 + $0x130] ss:$8 sps:$4 sm:$0xff]   ;;  %v904_v22 = vld [vmem:[#allocation5 + $0x124] ss:$8 sps:$4 sm:$0xff]   ;;  %v906_v23 = vld [vmem:[#allocation5 + $0x20] ss:$8 sps:$4 sm:$0xff]  }
  0x30   :  { %517 = vmatprep.subr.bf16.mxu1 %v886_v10  ;;  %v907_v24 = vld [vmem:[#allocation5 + $0x120] ss:$8 sps:$4 sm:$0xff]   ;;  %v908_v25 = vld [vmem:[#allocation5 + $0x14] ss:$8 sps:$4 sm:$0xff]   ;;  %v912_v27 = vld [vmem:[#allocation5 + $0x10] ss:$8 sps:$4 sm:$0xff]  }
  0x31   :  { %v910_v26 = vld [vmem:[#allocation5 + $0x114] ss:$8 sps:$4 sm:$0xff]   ;;  %v913_v28 = vld [vmem:[#allocation5 + $0x110] ss:$8 sps:$4 sm:$0xff]   ;;  %v914_v29 = vld [vmem:[#allocation5 + $0x4] ss:$8 sps:$4 sm:$0xff]  }
  0x32   :  { %477 = vmatpush1.bf16.msra.mxu0 %v888_v11  ;;  %v916_v30 = vld [vmem:[#allocation5 + $0x104] ss:$8 sps:$4 sm:$0xff]   ;;  %v918_v31 = vld [vmem:[#allocation5] ss:$8 sps:$4 sm:$0xff]   ;;  %v920_v33 = vld [vmem:[#allocation5 + $0xf4] ss:$8 sps:$4 sm:$0xff]  }
  0x33   :  { %518 = vmatpush1.bf16.msra.mxu1 %v889_v12  ;;  %478 = vmatprep.subr.bf16.mxu0 %v890_v13  ;;  %v919_v32 = vld [vmem:[#allocation5 + $0x100] ss:$8 sps:$4 sm:$0xff]   ;;  %v922_v34 = vld [vmem:[#allocation5 + $0x1f4] ss:$8 sps:$4 sm:$0xff]   ;;  %v924_v35 = vld [vmem:[#allocation5 + $0xf0] ss:$8 sps:$4 sm:$0xff]  }
  0x34   :  { %519 = vmatprep.subr.bf16.mxu1 %v892_v14  ;;  %v925_v36 = vld [vmem:[#allocation5 + $0x1f0] ss:$8 sps:$4 sm:$0xff]   ;;  %v926_v37 = vld [vmem:[#allocation5 + $0xe4] ss:$8 sps:$4 sm:$0xff]   ;;  %v930_v39 = vld [vmem:[#allocation5 + $0xe0] ss:$8 sps:$4 sm:$0xff]  }
  0x35   :  { %v928_v38 = vld [vmem:[#allocation5 + $0x1e4] ss:$8 sps:$4 sm:$0xff]   ;;  %v931_v40 = vld [vmem:[#allocation5 + $0x1e0] ss:$8 sps:$4 sm:$0xff]   ;;  %v932_v41 = vld [vmem:[#allocation5 + $0xd4] ss:$8 sps:$4 sm:$0xff]  }
  0x36   :  { %479 = vmatpush1.bf16.msra.mxu0 %v894_v15  ;;  %v934_v42 = vld [vmem:[#allocation5 + $0x1d4] ss:$8 sps:$4 sm:$0xff]   ;;  %v936_v43 = vld [vmem:[#allocation5 + $0xd0] ss:$8 sps:$4 sm:$0xff]   ;;  %v938_v45 = vld [vmem:[#allocation5 + $0xc4] ss:$8 sps:$4 sm:$0xff]  }
  0x37   :  { %520 = vmatpush1.bf16.msra.mxu1 %v895_v16  ;;  %480 = vmatprep.subr.bf16.mxu0 %v896_v17  ;;  %v937_v44 = vld [vmem:[#allocation5 + $0x1d0] ss:$8 sps:$4 sm:$0xff]   ;;  %v940_v46 = vld [vmem:[#allocation5 + $0x1c4] ss:$8 sps:$4 sm:$0xff]   ;;  %v942_v48 = vld [vmem:[#allocation5 + $0xc0] ss:$8 sps:$4 sm:$0xff]  }
  0x38   :  { %521 = vmatprep.subr.bf16.mxu1 %v898_v18  ;;  %v69_v47 = vld [vmem:[#allocation3 + $0x8] sm:$0xff]  ;;  %v71_v51 = vld [vmem:[#allocation3 + $0x18] sm:$0xff]  ;;  %v68_v5 = vld [vmem:[#allocation3] sm:$0xff]  ;;  %vm752_vm0 = vcmask 7168  }
  0x39   :  { %v943_v49 = vld [vmem:[#allocation5 + $0x1c0] ss:$8 sps:$4 sm:$0xff]   ;;  %v73_v50 = vpack.c.bf16 %v69_v47, %v69_v47  ;;  %v944_v52 = vld [vmem:[#allocation5 + $0xb4] ss:$8 sps:$4 sm:$0xff]   ;;  %v75_v53 = vpack.c.bf16 %v71_v51, %v71_v51  ;;  %v948_v55 = vld [vmem:[#allocation5 + $0xb0] ss:$8 sps:$4 sm:$0xff]   ;;  %v72_v8 = vpack.c.bf16 %v68_v5, %v68_v5 }
  0x3a   :  { %481 = vmatpush1.bf16.msra.mxu0 %v900_v19  ;;  %v946_v54 = vld [vmem:[#allocation5 + $0x1b4] ss:$8 sps:$4 sm:$0xff]   ;;  %v949_v56 = vld [vmem:[#allocation5 + $0x1b0] ss:$8 sps:$4 sm:$0xff]   ;;  %v950_v57 = vld [vmem:[#allocation5 + $0xa4] ss:$8 sps:$4 sm:$0xff]  }
  0x3b   :  { %522 = vmatpush1.bf16.msra.mxu1 %v901_v20  ;;  %482 = vmatprep.subr.bf16.mxu0 %v902_v21  ;;  %v952_v58 = vld [vmem:[#allocation5 + $0x1a4] ss:$8 sps:$4 sm:$0xff]   ;;  %v954_v59 = vld [vmem:[#allocation5 + $0xa0] ss:$8 sps:$4 sm:$0xff]   ;;  %v956_v61 = vld [vmem:[#allocation5 + $0x94] ss:$8 sps:$4 sm:$0xff]  }
  0x3c   :  { %523 = vmatprep.subr.bf16.mxu1 %v904_v22  ;;  %504 = vmatprep.mubr.bf16.mxu0 %v73_v50  ;;  %v955_v60 = vld [vmem:[#allocation5 + $0x1a0] ss:$8 sps:$4 sm:$0xff]   ;;  %v958_v62 = vld [vmem:[#allocation5 + $0x194] ss:$8 sps:$4 sm:$0xff]   ;;  %v960_v63 = vld [vmem:[#allocation5 + $0x90] ss:$8 sps:$4 sm:$0xff]  }
  0x3d   :  { %545 = vmatprep.mubr.bf16.mxu1 %v75_v53  ;;  %v961_v0 = vld [vmem:[#allocation5 + $0x190] ss:$8 sps:$4 sm:$0xff]   ;;  %v962_v1 = vld [vmem:[#allocation5 + $0x84] ss:$8 sps:$4 sm:$0xff]   ;;  %v966_v3 = vld [vmem:[#allocation5 + $0x80] ss:$8 sps:$4 sm:$0xff]  }
  0x3e   :  { %483 = vmatpush1.bf16.msra.mxu0 %v906_v23  ;;  %v964_v2 = vld [vmem:[#allocation5 + $0x184] ss:$8 sps:$4 sm:$0xff]   ;;  %v967_v4 = vld [vmem:[#allocation5 + $0x180] ss:$8 sps:$4 sm:$0xff]   ;;  %v70_v6 = vld [vmem:[#allocation3 + $0x10] sm:$0xff] }
  0x3f   :  { %524 = vmatpush1.bf16.msra.mxu1 %v907_v24  ;;  %484 = vmatprep.subr.bf16.mxu0 %v908_v25  ;;  %v968_v7 = vld [vmem:[#allocation7 + $0x78] sm:$0xff]   ;;  %v74_v9 = vpack.c.bf16 %v70_v6, %v70_v6  ;;  %v970_v11 = vld [vmem:[#allocation7 + $0x70] sm:$0xff]   ;;  %v972_v13 = vld [vmem:[#allocation7 + $0x68] sm:$0xff]   ;;  %v142_v25 = vlaneseq }
  0x40   :  { %525 = vmatprep.subr.bf16.mxu1 %v910_v26  ;;  %v969_v10 = vld [vmem:[#allocation7 + $0x38] sm:$0xff]   ;;  %v971_v12 = vld [vmem:[#allocation7 + $0x30] sm:$0xff]   ;;  %v973_v14 = vld [vmem:[#allocation7 + $0x28] sm:$0xff]  }
  0x41   :  { %v974_v15 = vld [vmem:[#allocation7 + $0x60] sm:$0xff]   ;;  %v976_v17 = vld [vmem:[#allocation7 + $0x58] sm:$0xff]   ;;  %v978_v19 = vld [vmem:[#allocation7 + $0x50] sm:$0xff]   ;;  %v143_v26 = vshrl.u32 %v142_v25, 7 }
  0x42   :  { %485 = vmatpush1.bf16.msra.mxu0 %v912_v27  ;;  %v975_v16 = vld [vmem:[#allocation7 + $0x20] sm:$0xff]   ;;  %v977_v18 = vld [vmem:[#allocation7 + $0x18] sm:$0xff]   ;;  %v979_v20 = vld [vmem:[#allocation7 + $0x10] sm:$0xff]  }
  0x43   :  { %526 = vmatpush1.bf16.msra.mxu1 %v913_v28  ;;  %486 = vmatprep.subr.bf16.mxu0 %v914_v29  ;;  %v980_v21 = vld [vmem:[#allocation7 + $0x48] sm:$0xff]   ;;  %v982_v23 = vld [vmem:[#allocation7 + $0x40] sm:$0xff]   ;;  %v144_v27 = vsub.s32 0, %v143_v26  ;;  %v148_v29 = vsub.s32 1, %v143_v26  ;;  %v824_v50 = vld [vmem:[%s1123_s4] ss:$0 sm:$0xff] }
  0x44   :  { %527 = vmatprep.subr.bf16.mxu1 %v916_v30  ;;  %v981_v22 = vld [vmem:[#allocation7 + $0x8] sm:$0xff]   ;;  %v983_v24 = vld [vmem:[#allocation7] sm:$0xff]  }
  0x45   :  { %v140_v28 = vld [vmem:[%s1121_s2] sm:$0x3] }
  0x46   :  { %487 = vmatpush1.bf16.msra.mxu0 %v918_v31  ;;  %v145_v30 = vrot.slane %v140_v28, %v144_v27  ;;  %v149_v31 = vrot.slane %v140_v28, %v148_v29 }
  0x47   :  { %528 = vmatpush1.bf16.msra.mxu1 %v919_v32  ;;  %488 = vmatprep.subr.bf16.mxu0 %v920_v33 }
  0x48   :  { %529 = vmatprep.subr.bf16.mxu1 %v922_v34 }
  0x4a   :  { %489 = vmatpush2.bf16.msra.mxu0 %v924_v35 }
  0x4b   :  { %530 = vmatpush2.bf16.msra.mxu1 %v925_v36  ;;  %490 = vmatprep.subr.bf16.mxu0 %v926_v37 }
  0x4c   :  { %531 = vmatprep.subr.bf16.mxu1 %v928_v38 }
  0x4e   :  { %491 = vmatpush2.bf16.msra.mxu0 %v930_v39 }
  0x4f   :  { %532 = vmatpush2.bf16.msra.mxu1 %v931_v40  ;;  %492 = vmatprep.subr.bf16.mxu0 %v932_v41 }
  0x50   :  { %533 = vmatprep.subr.bf16.mxu1 %v934_v42 }
  0x52   :  { %493 = vmatpush2.bf16.msra.mxu0 %v936_v43 }
  0x53   :  { %534 = vmatpush2.bf16.msra.mxu1 %v937_v44  ;;  %494 = vmatprep.subr.bf16.mxu0 %v938_v45 }
  0x54   :  { %535 = vmatprep.subr.bf16.mxu1 %v940_v46 }
  0x56   :  { %495 = vmatpush2.bf16.msra.mxu0 %v942_v48 }
  0x57   :  { %536 = vmatpush2.bf16.msra.mxu1 %v943_v49  ;;  %496 = vmatprep.subr.bf16.mxu0 %v944_v52 }
  0x58   :  { %537 = vmatprep.subr.bf16.mxu1 %v946_v54 }
  0x5a   :  { %497 = vmatpush2.bf16.msra.mxu0 %v948_v55  ;;  %v841_v55 = vld [vmem:[%s1124_s5] ss:$0 sm:$0xff] }
  0x5b   :  { %538 = vmatpush2.bf16.msra.mxu1 %v949_v56  ;;  %498 = vmatprep.subr.bf16.mxu0 %v950_v57 }
  0x5c   :  { %539 = vmatprep.subr.bf16.mxu1 %v952_v58  ;;  %v842_v58 = vld [vmem:[#allocation2] ss:$0 sm:$0xff] }
  0x5e   :  { %499 = vmatpush2.bf16.msra.mxu0 %v954_v59 }
  0x5f   :  { %540 = vmatpush2.bf16.msra.mxu1 %v955_v60  ;;  %500 = vmatprep.subr.bf16.mxu0 %v956_v61 }
  0x60   :  { %541 = vmatprep.subr.bf16.mxu1 %v958_v62 }
  0x62   :  { %501 = vmatpush2.bf16.msra.mxu0 %v960_v63 }
  0x63   :  { %542 = vmatpush2.bf16.msra.mxu1 %v961_v0  ;;  %502 = vmatprep.subr.bf16.mxu0 %v962_v1 }
  0x64   :  { %543 = vmatprep.subr.bf16.mxu1 %v964_v2 }
  0x66   :  { %503 = vmatpush2.bf16.msra.mxu0 %v966_v3 }
  0x67   :  { %544 = vmatpush2.bf16.msra.mxu1 %v967_v4  ;;  %843 = vmatprep.subr.bf16.mxu0 %v968_v7 }
  0x69   :  { %505 = vmatmul.mubr.bf16.vlgmr.msra.gmra.mxu0 %v72_v8 }
  0x6a   :  { %546 = vmatmul.mubr.bf16.vlgmr.msra.gmra.mxu1 %v74_v9  ;;  %844 = vmatpush3.bf16.msra.mxu0 %v969_v10 }
  0x6b   :  { %845 = vmatprep.subr.bf16.mxu0 %v970_v11 }
  0x6e   :  { %846 = vmatpush3.bf16.msra.mxu0 %v971_v12 }
  0x6f   :  { %847 = vmatprep.subr.bf16.mxu0 %v972_v13 }
  0x72   :  { %848 = vmatpush3.bf16.msra.mxu0 %v973_v14 }
  0x73   :  { %849 = vmatprep.subr.bf16.mxu0 %v974_v15 }
  0x76   :  { %850 = vmatpush3.bf16.msra.mxu0 %v975_v16 }
  0x77   :  { %851 = vmatprep.subr.bf16.mxu0 %v976_v17 }
  0x7a   :  { %852 = vmatpush3.bf16.msra.mxu0 %v977_v18 }
  0x7b   :  { %853 = vmatprep.subr.bf16.mxu0 %v978_v19 }
  0x7e   :  { %854 = vmatpush3.bf16.msra.mxu0 %v979_v20 }
  0x7f   :  { %855 = vmatprep.subr.bf16.mxu0 %v980_v21 }
  0x82   :  { %856 = vmatpush3.bf16.msra.mxu0 %v981_v22 }
  0x83   :  { %857 = vmatprep.subr.bf16.mxu0 %v982_v23 }
  0x86   :  { %858 = vmatpush3.bf16.msra.mxu0 %v983_v24 }
 0x129   :  { %v506_v32 = vpop.f32.mrf.mxu0 }
 0x12a   :  { %v547_v33 = vpop.f32.mrf.mxu1  ;;  %v507_v34 = vadd.f32 %v506_v32, %v145_v30 }
 0x12b   :  { %v508_v35 = vpop.f32.mrf.mxu0 }
 0x12c   :  { %v549_v36 = vpop.f32.mrf.mxu1  ;;  %v548_v37 = vadd.f32 %v547_v33, %v507_v34  ;;  %v509_v38 = vadd.f32 %v508_v35, %v149_v31 }
 0x12d   :  { %v510_v39 = vpop.f32.mrf.mxu0 }
 0x12e   :  { %v551_v40 = vpop.f32.mrf.mxu1  ;;  %v550_v41 = vadd.f32 %v549_v36, %v509_v38  ;;  %v554_v42 = vmax.f32 %v548_v37, 0.0 }
 0x12f   :  { %v511_v43 = vpop.f32.mrf.mxu0 }
 0x130   :  { %v552_v44 = vpop.f32.mrf.mxu1  ;;  %v555_v45 = vmax.f32 %v550_v41, 0.0  ;;  %v556_v47 = vpack.c.bf16 %v554_v42, %v554_v42 }
 0x132   :  { %v557_v46 = vpack.c.bf16 %v555_v45, %v555_v45 }
 0x134   :  { %725 = vmatprep.mubr.bf16.mxu0 %v557_v46 }
 0x135   :  { %726 = vmatmul.mubr.bf16.vlgmr.msra.gmra.mxu0 %v556_v47 }
 0x1f5   :  { %v859_v48 = vpop.f32.mrf.mxu0 }
 0x1f7   :  { %v860_v49 = vpop.f32.mrf.mxu0 }
 0x1f8   :  { %v861_v51 = vadd.f32 %v860_v49, %v859_v48 }
 0x1f9   :  { %v862_v52 = vpop.f32.mrf.mxu0 }
 0x1fa   :  { %v728_v53 = vadd.f32 %v861_v51, %v824_v50 }
 0x1fb   :  { %v863_v54 = vpop.f32.mrf.mxu0 }
 0x1fc   :  { %v733_v56 = vmax.f32 %v728_v53, 0.0 }
 0x1fe   :  { %v741_v57 = vmul.f32 %v841_v55, %v733_v56 }
 0x200   :  { %742 = vadd.xlane.f32.xlu0 %v741_v57 }
 0x289   :  { %v743_v59 = vpop.xlane.xlu0 %742 }
 0x28a   :  { %v751_v60 = vadd.f32 %v842_v58, %v743_v59 }
 0x28c   :  { %753 = vst.msk [vmem:[%s1126_s7] sm:$0xff] %vm752_vm0, %v751_v60 }
 0x28d   :  { %758 = vsyncpa [#allocation4], 1 }
 0x28e   :  { %759 = vsyncpa [#allocation6], 1 }

</bundles_post_ra>
